<compile_context>
chip_gen: v7x
topology: tpu7x:2x2x1
jax: 0.10.0
libtpu: 0.0.40
codegen_flags: <defaults>
</compile_context>

<pallas_src>
import jax
import jax.numpy as jnp
import numpy as np
from jax.experimental import pallas as pl
from jax.experimental.pallas import tpu as pltpu


def _round_up(a: int, b: int) -> int:
    return ((a + b - 1) // b) * b


# --------------------------------------------------------------------------
# Fused kernel:  folded Linear(1,H) -> ReLU -> Linear(H,C) -> log_softmax
# --------------------------------------------------------------------------
def fused_seq_kernel(x_ref, we_ref, be_ref, w2_ref, b2_ref, o_ref):
    # x_ref : (1, T)  tokens for this grid step (lane-dense slab)
    # we_ref: (H, 1)  folded weight  W1 @ W_amp
    # be_ref: (H, 1)  folded bias    W1 @ b_amp + b1
    # w2_ref: (C, H)  decoder Linear(H, C).weight  (f32 default, bf16 optional)
    # b2_ref: (C, 1)  f32
    # o_ref : (C, T)  log-probabilities, transposed (lane-dense store)
    x = x_ref[...]                                                     # (1, T) f32

    # amplify + Linear(E,H) folded; Dropout is eval-mode identity.  Pure VPU.
    h = jnp.maximum(we_ref[...] * x + be_ref[...], 0.0)               # (H, T) f32

    w2 = w2_ref[...]
    # astype is a no-op on the default f32 path (same dtype); only costs on bf16 opt-in.
    logits = jnp.dot(w2, h.astype(w2.dtype),
                     preferred_element_type=jnp.float32) + b2_ref[...]  # (C, T) f32

    # log_softmax over the class axis (sublane axis in this layout).
    m = jnp.max(logits, axis=0, keepdims=True)                         # (1, T)
    s = logits - m
    lse = jnp.log(jnp.sum(jnp.exp(s), axis=0, keepdims=True))          # (1, T)
    o_ref[...] = (s - lse).astype(o_ref.dtype)


# --------------------------------------------------------------------------
# Wrapper
# --------------------------------------------------------------------------
def base_seq_model_forward(x, params, *, row_tile=4096, min_grid=2,
                           weight_dtype=jnp.float32, out_layout="bsc"):
    """x: (B, S) float; params use nn.Linear (out, in) weight / (out,) bias layout.

    row_tile     : tokens per grid step (128-aligned; 2048-8192 at production sizes).
    min_grid     : keep at least this many grid steps (2 -> both v7x TensorCores busy).
    weight_dtype : jnp.float32 (default; no casts, right choice on v5e/v6e and fine on
                   v7x) or jnp.bfloat16 (optional MXU path, f32 accumulation, looser
                   numerics) -- only worth it if the (C,H) matmul ever binds.
    out_layout   : "bsc" -> (B, S, C) like the PyTorch module (costs one XLA transpose
                   of the (C,N) result); "cn" -> raw lane-dense (C, N) slab for fused
                   consumers (e.g. NLLLoss-style gathers), skipping that transpose.
    """
    B, S = x.shape
    E = params["w_amp"].shape[0]
    H = params["w1"].shape[0]
    C = params["w2"].shape[0]
    N = B * S
    f32 = jnp.float32

    # ---- fold amplifier Linear(1,E) + decoder Linear(E,H) into Linear(1,H) (exact) --
    w_amp = params["w_amp"].reshape(E, 1).astype(f32)
    b_amp = params["b_amp"].reshape(E).astype(f32)
    w1 = params["w1"].astype(f32)                                   # (H, E)
    b1 = params["b1"].reshape(H).astype(f32)
    w_eff = (w1 @ w_amp).reshape(H, 1)                              # (H, 1)
    b_eff = (w1 @ b_amp + b1).reshape(H, 1)                         # (H, 1)
    w2 = params["w2"].astype(weight_dtype)                          # (C, H)
    b2 = params["b2"].reshape(C, 1).astype(f32)

    # ---- tiling: pad output to 128, decouple the grid from the padding ---------------
    n_out = _round_up(max(N, 1), 128)                               # output slab width
    row_tile = max(128, _round_up(int(row_tile), 128))
    row_tile = min(row_tile, n_out)
    if min_grid > 1:
        # Cap the tile so the grid has >= min_grid steps (v7x: 2 TCs).
        row_tile = min(row_tile, max(128, _round_up(pl.cdiv(n_out, min_grid), 128)))

    # VMEM working-set budget (bytes per token column, f32):
    #   2x double-buffered (1,T) input (padded to 8 sublanes in VMEM) + 2x (C,T) output
    #   + ~3 (H,T)-sized temporaries (h / logits / softmax headroom).
    bpt = 4 * (2 * 8 + 2 * max(C, 8) + 3 * H)
    weight_bytes = 4 * 2 * (2 * H * 128 + max(C, 8) * _round_up(H, 128) + max(C, 8) * 128)
    vmem_budget = 40 * 2**20                    # conservative vs v7x 64 MiB physical
    cap_tokens = max(128, ((vmem_budget - weight_bytes) // bpt) // 128 * 128)
    row_tile = min(row_tile, cap_tokens)

    grid = pl.cdiv(n_out, row_tile)
    n_in = grid * row_tile                      # input fully padded -> no OOB reads

    x_row = x.reshape(N).astype(f32)
    if n_in != N:
        x_row = jnp.pad(x_row, (0, n_in - N))
    x_row = x_row.reshape(1, n_in)

    vmem_limit = int(min(56 * 2**20, max(32 * 2**20,
                                         1.25 * (row_tile * bpt + weight_bytes))))

    wbytes = jnp.dtype(weight_dtype).itemsize
    cost = pl.CostEstimate(
        flops=n_in * (3 * H + 2 * H * C + 4 * C),
        transcendentals=n_in * (C + 1),                    # exp over classes + log
        bytes_accessed=n_in * 4 * 8                        # token read (8x sublane pad)
        + n_out * C * 4                                    # log-prob store
        + C * H * wbytes + (2 * H + 2 * C) * 4,            # resident weights/biases
    )

    const = lambda i: (0, 0)
    out = pl.pallas_call(
        fused_seq_kernel,
        out_shape=jax.ShapeDtypeStruct((C, n_out), jnp.float32),
        grid_spec=pltpu.PrefetchScalarGridSpec(
            num_scalar_prefetch=0,
            grid=(grid,),
            in_specs=[
                pl.BlockSpec((1, row_tile), lambda i: (0, i)),   # tokens (lane-dense)
                # Weights/biases: constant index_map -> fetched once, kept resident.
                pl.BlockSpec((H, 1), const),
                pl.BlockSpec((H, 1), const),
                pl.BlockSpec((C, H), const),
                pl.BlockSpec((C, 1), const),
            ],
            # Ragged last tile: stores past n_out are masked by Pallas.
            out_specs=pl.BlockSpec((C, row_tile), lambda i: (0, i)),
        ),
        compiler_params=pltpu.CompilerParams(
            dimension_semantics=("parallel",),
            vmem_limit_bytes=vmem_limit,
        ),
        cost_estimate=cost,
    )(x_row, w_eff, b_eff, w2, b2)

    if out_layout == "cn":
        return out[:, :N]                       # lane-dense slab for fused consumers
    # (B,S,C) like the PyTorch module; the transpose is XLA-side layout plumbing that
    # re-reads/writes the (C,N) result once -- use out_layout="cn" to skip it.
    return out[:, :N].T.reshape(B, S, C)


# --------------------------------------------------------------------------
# Pure-JAX reference (unfolded math, for correctness checking)
# --------------------------------------------------------------------------
def reference_forward(x, params):
    emb = x[..., None] * params["w_amp"].reshape(-1) + params["b_amp"]      # (B,S,E)
    h = jnp.maximum(emb @ params["w1"].T + params["b1"], 0.0)               # (B,S,H)
    logits = h @ params["w2"].T + params["b2"]                              # (B,S,C)
    return jax.nn.log_softmax(logits, axis=-1)


# --------------------------------------------------------------------------
# Main
# --------------------------------------------------------------------------
if __name__ == "__main__":
    B, S = 4, 96          # N = 384 tokens -> n_out = 512
    E, H, C = 32, 64, 8   # embed_dim, hidden_dim, class_num

    key = jax.random.PRNGKey(0)
    k_x, k_wa, k_ba, k_w1, k_b1, k_w2, k_b2 = jax.random.split(key, 7)
    x = jax.random.normal(k_x, (B, S), dtype=jnp.float32)

    # nn.Linear-style init: weight (out, in), bias (out,).
    def uinit(k, shape, fan_in):
        bound = 1.0 / np.sqrt(fan_in)
        return jax.random.uniform(k, shape, jnp.float32, -bound, bound)

    params = {
        "w_amp": uinit(k_wa, (E, 1), 1),      # default_amplifier: Linear(1, E)
        "b_amp": uinit(k_ba, (E,), 1),
        "w1":    uinit(k_w1, (H, E), E),      # decoder Linear(E, H)
        "b1":    uinit(k_b1, (H,), E),
        "w2":    uinit(k_w2, (C, H), H),      # decoder Linear(H, C)
        "b2":    uinit(k_b2, (H,), H)[:C] if False else uinit(k_b2, (C,), H),
    }

    ref = reference_forward(x, params)

    # 1) Default path: f32 weights, folded amplifier, grid split in 2 (v7x-friendly).
    out = jax.block_until_ready(base_seq_model_forward(x, params))
    np.testing.assert_allclose(np.asarray(out), np.asarray(ref), rtol=1e-5, atol=1e-5)

    # 2) Ragged-last-tile path: row_tile=384 over n_out=512 -> masked final store.
    out_rag = jax.block_until_ready(
        base_seq_model_forward(x, params, row_tile=384, min_grid=1))
    np.testing.assert_allclose(np.asarray(out_rag), np.asarray(ref), rtol=1e-5, atol=1e-5)

    # 3) Lane-dense (C, N) output layout (skips the wrapper transpose).
    out_cn = jax.block_until_ready(
        base_seq_model_forward(x, params, out_layout="cn"))
    np.testing.assert_allclose(np.asarray(out_cn),
                               np.asarray(ref).reshape(-1, C).T, rtol=1e-5, atol=1e-5)

    # 4) Optional bf16 weight path (f32 accumulation): intentionally looser numerics.
    out_bf16 = jax.block_until_ready(
        base_seq_model_forward(x, params, weight_dtype=jnp.bfloat16))
    np.testing.assert_allclose(np.asarray(out_bf16), np.asarray(ref), rtol=1e-1, atol=1e-1)

    print("KERNEL_OK")
</pallas_src>

<mosaic_0001>
module attributes {stable_mosaic.version = 11 : i64} {
  func.func @fused_seq_kernel(%arg0: i32, %arg1: memref<1x256xf32, #tpu.memory_space<vmem>>, %arg2: memref<64x1xf32, #tpu.memory_space<vmem>>, %arg3: memref<64x1xf32, #tpu.memory_space<vmem>>, %arg4: memref<8x64xf32, #tpu.memory_space<vmem>>, %arg5: memref<8x1xf32, #tpu.memory_space<vmem>>, %arg6: memref<8x256xf32, #tpu.memory_space<vmem>>) attributes {dimension_semantics = [#tpu.dimension_semantics<parallel>], iteration_bounds = array<i64: 2>, scalar_prefetch = 0 : i64, scratch_operands = 0 : i64, tpu.core_type = #tpu.core_type<tc>, window_params = [{transform_indices = @transform_0, window_bounds = array<i64: 1, 256>}, {pipeline_mode = #tpu.pipeline_mode<synchronous>, transform_indices = @transform_1, window_bounds = array<i64: 64, 1>}, {pipeline_mode = #tpu.pipeline_mode<synchronous>, transform_indices = @transform_2, window_bounds = array<i64: 64, 1>}, {pipeline_mode = #tpu.pipeline_mode<synchronous>, transform_indices = @transform_3, window_bounds = array<i64: 8, 64>}, {pipeline_mode = #tpu.pipeline_mode<synchronous>, transform_indices = @transform_4, window_bounds = array<i64: 8, 1>}, {transform_indices = @transform_5, window_bounds = array<i64: 8, 256>}]} {
    %c0 = arith.constant 0 : index
    %c0_0 = arith.constant 0 : index
    %0 = vector.load %arg1[%c0, %c0_0] : memref<1x256xf32, #tpu.memory_space<vmem>>, vector<1x256xf32>
    %c0_1 = arith.constant 0 : index
    %c0_2 = arith.constant 0 : index
    %1 = vector.load %arg2[%c0_1, %c0_2] : memref<64x1xf32, #tpu.memory_space<vmem>>, vector<64x1xf32>
    %2 = vector.broadcast %1 : vector<64x1xf32> to vector<64x256xf32>
    %3 = vector.broadcast %0 : vector<1x256xf32> to vector<64x256xf32>
    %4 = arith.mulf %2, %3 : vector<64x256xf32>
    %c0_3 = arith.constant 0 : index
    %c0_4 = arith.constant 0 : index
    %5 = vector.load %arg3[%c0_3, %c0_4] : memref<64x1xf32, #tpu.memory_space<vmem>>, vector<64x1xf32>
    %6 = vector.broadcast %5 : vector<64x1xf32> to vector<64x256xf32>
    %7 = arith.addf %4, %6 : vector<64x256xf32>
    %cst = arith.constant 0.000000e+00 : f32
    %8 = vector.broadcast %cst : f32 to vector<64x256xf32>
    %9 = arith.maximumf %7, %8 : vector<64x256xf32>
    %c0_5 = arith.constant 0 : index
    %c0_6 = arith.constant 0 : index
    %10 = vector.load %arg4[%c0_5, %c0_6] : memref<8x64xf32, #tpu.memory_space<vmem>>, vector<8x64xf32>
    %cst_7 = arith.constant dense<0.000000e+00> : vector<8x256xf32>
    %11 = tpu.matmul %10, %9, %cst_7 {dimension_numbers = #tpu.dot_dimension_numbers<[1], [0], [0], [1], [0, 0, 1, 1], [], []>} : vector<8x64xf32>, vector<64x256xf32>, vector<8x256xf32> -> vector<8x256xf32>
    %c0_8 = arith.constant 0 : index
    %c0_9 = arith.constant 0 : index
    %12 = vector.load %arg5[%c0_8, %c0_9] : memref<8x1xf32, #tpu.memory_space<vmem>>, vector<8x1xf32>
    %13 = vector.broadcast %12 : vector<8x1xf32> to vector<8x256xf32>
    %14 = arith.addf %11, %13 : vector<8x256xf32>
    %cst_10 = arith.constant dense<0xFF800000> : vector<256xf32>
    %15 = vector.multi_reduction <maximumf>, %14, %cst_10 [0] : vector<8x256xf32> to vector<256xf32>
    %16 = vector.shape_cast %15 : vector<256xf32> to vector<1x256xf32>
    %17 = vector.broadcast %16 : vector<1x256xf32> to vector<8x256xf32>
    %18 = arith.subf %14, %17 : vector<8x256xf32>
    %19 = math.exp %18 : vector<8x256xf32>
    %cst_11 = arith.constant dense<0.000000e+00> : vector<256xf32>
    %20 = vector.multi_reduction <add>, %19, %cst_11 [0] : vector<8x256xf32> to vector<256xf32>
    %21 = vector.shape_cast %20 : vector<256xf32> to vector<1x256xf32>
    %22 = math.log %21 : vector<1x256xf32>
    %23 = vector.broadcast %22 : vector<1x256xf32> to vector<8x256xf32>
    %24 = arith.subf %18, %23 : vector<8x256xf32>
    %c0_12 = arith.constant 0 : index
    %c0_13 = arith.constant 0 : index
    %25 = vector.load %arg6[%c0_12, %c0_13] : memref<8x256xf32, #tpu.memory_space<vmem>>, vector<8x256xf32>
    tpu.vector_store %arg6[%c0_12, %c0_13], %24 {strides = array<i32>} : memref<8x256xf32, #tpu.memory_space<vmem>>, vector<8x256xf32>,
    return
  }
  func.func @transform_0(%arg0: i32) -> (i32, i32) {
    %c0_i32 = arith.constant 0 : i32
    %c0_i32_0 = arith.constant 0 : i32
    return %c0_i32, %arg0 : i32, i32
  }
  func.func @transform_1(%arg0: i32) -> (i32, i32) {
    %c0_i32 = arith.constant 0 : i32
    %c0_i32_0 = arith.constant 0 : i32
    %c0_i32_1 = arith.constant 0 : i32
    return %c0_i32, %c0_i32_0 : i32, i32
  }
  func.func @transform_2(%arg0: i32) -> (i32, i32) {
    %c0_i32 = arith.constant 0 : i32
    %c0_i32_0 = arith.constant 0 : i32
    %c0_i32_1 = arith.constant 0 : i32
    return %c0_i32, %c0_i32_0 : i32, i32
  }
  func.func @transform_3(%arg0: i32) -> (i32, i32) {
    %c0_i32 = arith.constant 0 : i32
    %c0_i32_0 = arith.constant 0 : i32
    %c0_i32_1 = arith.constant 0 : i32
    return %c0_i32, %c0_i32_0 : i32, i32
  }
  func.func @transform_4(%arg0: i32) -> (i32, i32) {
    %c0_i32 = arith.constant 0 : i32
    %c0_i32_0 = arith.constant 0 : i32
    %c0_i32_1 = arith.constant 0 : i32
    return %c0_i32, %c0_i32_0 : i32, i32
  }
  func.func @transform_5(%arg0: i32) -> (i32, i32) {
    %c0_i32 = arith.constant 0 : i32
    %c0_i32_0 = arith.constant 0 : i32
    return %c0_i32, %arg0 : i32, i32
  }
}

</mosaic_0001>

<bundles_post_ra>
// kernel: tpu_custom_call.1
= control target key start
LH: loop header
LB: loop body
LE: loop exit
PB: predicated region body
PF: predicated region fallthrough
CT: control target
= control target key end

     0   :  { %10 = vsyncpa [#allocation3], 0  ;;  %s949_s0 = inlined_call_operand.vmem [shape: f32[1,512], index: 0, kind: input, shape index: {}]   ;;  %s950_s1 = inlined_call_operand.vmem [shape: f32[64,1], index: 1, kind: input, shape index: {}]   ;;  %s951_s2 = inlined_call_operand.vmem [shape: f32[64,1], index: 2, kind: input, shape index: {}]   ;;  %s952_s3 = inlined_call_operand.vmem [shape: f32[8,64], index: 3, kind: input, shape index: {}]   ;;  %s953_s4 = inlined_call_operand.vmem [shape: f32[8,1], index: 4, kind: input, shape index: {}]   ;;  %s954_s5 = inlined_call_operand.hbm [shape: f32[8,384], index: 5, kind: output, shape index: {}]  }
   0x1   :  { %12 = vsyncpa [#allocation3 + $0x1], 0  ;;  %s760_s18 = smov 0   ;;  %s762_s19 = smov 0  }
   0x2   :  { %s764_s20 = smov 0   ;;  %s766_s21 = smov 0  }
   0x3 LB: > { %s781_s22 = sadd.s32 4294967295, %s725_s21   ;;  %s580_s23 = sadd.s32 4294967294, %s725_s21   ;;  %s725_s21 = sphi %s766_s21, %s960_s21   ;;  %s721_s20 = sphi %s764_s20, %s959_s20   ;;  %s717_s19 = sphi %s762_s19, %s958_s19   ;;  %s713_s18 = sphi %s760_s18, %s957_s18  }
   0x4   : > { %s785_s24 = sadd.s32 1, %s725_s21   ;;  %s135_s25 = sadd.s32 1, %s721_s20 }
   0x5   : > { %s132_s26 = ssub.s32 %s725_s21, %s785_s24  ;;  %p145_p0 = scmp.ne.s32.totalorder %s721_s20, %s717_s19 }
   0x6   : > { %p133_p1 = scmp.eq.s32.totalorder %s132_s26, 0  ;;  %p146_p2 = scmp.eq.s32.totalorder %s781_s22, 1 }
   0x7   : > { %p151_p3 = scmp.ne.s32.totalorder %s717_s19, %s713_s18  ;;  %p152_p4 = scmp.eq.s32.totalorder %s580_s23, 1 }
   0x8   : > { %s796_s27 = scalar_select %p133_p1, %s721_s20, %s135_s25  }
   0x9   : > { %p798_p5 = por %p146_p2, %p145_p0  ;;  %p802_p6 = por %p152_p4, %p151_p3 }
   0xa   : > { %p583_p7 = scmp.ge.s32.totalorder %s725_s21, 1  ;;  %p190_p8 = scmp.lt.s32.totalorder %s725_s21, 3 }
   0xc   : > { %p191_p9 = pnand %p583_p7, %p190_p8 }
   0xd   : > { %v303_v0 = vld [vmem:[%s951_s2] sm:$0xff] (!%p191_p9)  ;;  %v727_v2 = vmov (!%p191_p9), 0   ;;  %v304_v3 = vld [vmem:[%s951_s2 + $0x8] sm:$0xff] (!%p191_p9)  ;;  %v231_v5 = vld [vmem:[%s950_s1 + $0x18] sm:$0xff] (!%p191_p9)  ;;  %v728_v18 = vmov (!%p191_p9), 0.0   ;;  %s860_s7 = sshll.u32 (!%p191_p9), %s781_s22, 1  ;;  %v277_v19 = vlaneseq (!%p191_p9) }
   0xe   : > { %194 = sbr.rel (%p191_p9) target bundleno = 478 (0x1de), region = 40  ;;  %v228_v1 = vld [vmem:[%s950_s1] sm:$0xff] (!%p191_p9)  ;;  %654 = vset.pattern.permute.xlu1 (!%p191_p9), %v727_v2  ;;  %653 = vset.pattern.permute.xlu0 (!%p191_p9), %v727_v2  ;;  %v229_v4 = vld [vmem:[%s950_s1 + $0x8] sm:$0xff] (!%p191_p9)  ;;  %v230_v6 = vld [vmem:[%s950_s1 + $0x10] sm:$0xff] (!%p191_p9)  ;;  %p218_p10 = scmp.lt.s32.totalorder (!%p191_p9), %s860_s7, 3  ;;  %vm390_vm0 = vcmask (!%p191_p9), 523264  }
   0xf   : > { %313 = vperm.xlu1 (!%p191_p9), %654, %v303_v0   ;;  %238 = vperm.xlu0 (!%p191_p9), %653, %v228_v1   ;;  %v306_v7 = vld [vmem:[%s951_s2 + $0x18] sm:$0xff] (!%p191_p9)  ;;  %v305_v8 = vld [vmem:[%s951_s2 + $0x10] sm:$0xff] (!%p191_p9)  ;;  %v233_v9 = vld [vmem:[%s950_s1 + $0x28] sm:$0xff] (!%p191_p9)  ;;  %v278_v20 = vshrl.u32 (!%p191_p9), %v277_v19, 7  ;;  %s214_s14 = sand.u32 (!%p191_p9), 1, %s717_s19  }
  0x10   : > { %v232_v10 = vld [vmem:[%s950_s1 + $0x20] sm:$0xff] (!%p191_p9)  ;;  %v308_v11 = vld [vmem:[%s951_s2 + $0x28] sm:$0xff] (!%p191_p9)  ;;  %v235_v13 = vld [vmem:[%s950_s1 + $0x38] sm:$0xff] (!%p191_p9)  ;;  %458 = vmatprep.mubr.f32.mxu0 (!%p191_p9), %v728_v18  ;;  %s584_s15 = sshll.u32 (!%p191_p9), %s214_s14, 4  ;;  %s895_s17 = scalar_lea.sflag (!%p191_p9), [#allocation3], %s214_s14 }
  0x11   : > { %v307_v12 = vld [vmem:[%s951_s2 + $0x20] sm:$0xff] (!%p191_p9)  ;;  %v234_v14 = vld [vmem:[%s950_s1 + $0x30] sm:$0xff] (!%p191_p9)  ;;  %v310_v15 = vld [vmem:[%s951_s2 + $0x38] sm:$0xff] (!%p191_p9)  ;;  %v279_v21 = vsub.s32 (!%p191_p9), 0, %v278_v20  ;;  %v283_v22 = vsub.s32 (!%p191_p9), 1, %v278_v20  ;;  %s216_s16 = scalar_lea.vmem (!%p191_p9), [#allocation2], %s584_s15 }
  0x12   : > { %v309_v16 = vld [vmem:[%s951_s2 + $0x30] sm:$0xff] (!%p191_p9)  ;;  %v384_v17 = vld [vmem:[%s953_s4] sm:$0xff] (!%p191_p9) }
  0x13   : > { %318 = vperm.xlu1 (!%p191_p9), %654, %v304_v3   ;;  %243 = vperm.xlu0 (!%p191_p9), %653, %v229_v4  }
  0x15   : > { %s219_s8 = scalar_select %p218_p10, %s860_s7, 3 }
  0x16   : > { %s512_s23 = ssub.s32 (%p798_p5), 3, %s860_s7 }
  0x17   : > { %253 = vperm.xlu1 %654, %v231_v5   ;;  %248 = vperm.xlu0 %653, %v230_v6   ;;  %s220_s11 = scalar_lea.vmem %s949_s0, %s219_s8  ;;  %p513_p11 = scmp.lt.s32.totalorder (%p798_p5), %s512_s23, 2 }
  0x18   : > { %v227_v23 = vld [vmem:[%s220_s11] sm:$0x3] }
  0x19   : > { %v867_v24 = vrot.slane %v227_v23, %v279_v21  ;;  %v869_v25 = vrot.slane %v227_v23, %v283_v22 }
  0x1b   : > { %328 = vperm.xlu1 %654, %v306_v7   ;;  %323 = vperm.xlu0 %653, %v305_v8  }
  0x1f   : > { %263 = vperm.xlu1 %654, %v233_v9   ;;  %258 = vperm.xlu0 %653, %v232_v10  }
  0x23   : > { %338 = vperm.xlu1 %654, %v308_v11   ;;  %333 = vperm.xlu0 %653, %v307_v12  }
  0x27   : > { %273 = vperm.xlu1 %654, %v235_v13   ;;  %268 = vperm.xlu0 %653, %v234_v14  }
  0x2b   : > { %348 = vperm.xlu1 %654, %v310_v15   ;;  %343 = vperm.xlu0 %653, %v309_v16  }
  0x2f   : > { %387 = vperm.xlu0 %653, %v384_v17  }
  0x8e   : > { %v314_v26 = vpop.permute.xlu1 %313  ;;  %v239_v27 = vpop.permute.xlu0 %238 }
  0x8f   : > { %v287_v28 = vmul.f32 %v867_v24, %v239_v27  ;;  %v288_v29 = vmul.f32 %v869_v25, %v239_v27 }
  0x91   : > { %v351_v34 = vadd.f32 %v314_v26, %v287_v28  ;;  %v352_v35 = vadd.f32 %v314_v26, %v288_v29 }
  0x92   : > { %v319_v30 = vpop.permute.xlu1 %318  ;;  %v244_v31 = vpop.permute.xlu0 %243 }
  0x93   : > { %v289_v32 = vmul.f32 %v867_v24, %v244_v31  ;;  %v290_v33 = vmul.f32 %v869_v25, %v244_v31  ;;  %v368_v40 = vmax.f32 %v352_v35, 0.0  ;;  %v367_v42 = vmax.f32 %v351_v34, 0.0 }
  0x95   : > { %v353_v36 = vadd.f32 %v319_v30, %v289_v32  ;;  %v354_v37 = vadd.f32 %v319_v30, %v290_v33 }
  0x96   : > { %v254_v38 = vpop.permute.xlu1 %253  ;;  %v249_v39 = vpop.permute.xlu0 %248 }
  0x97   : > { %v370_v41 = vmax.f32 %v354_v37, 0.0  ;;  %v369_v43 = vmax.f32 %v353_v36, 0.0  ;;  %v293_v44 = vmul.f32 %v867_v24, %v254_v38  ;;  %v294_v45 = vmul.f32 %v869_v25, %v254_v38 }
  0x98   : > { %v291_v46 = vmul.f32 %v867_v24, %v249_v39  ;;  %v292_v47 = vmul.f32 %v869_v25, %v249_v39 }
  0x99   : > { %v597_v50 = vpack.c.bf16 %v370_v41, %v368_v40  ;;  %v599_v51 = vpack.c.bf16 %v369_v43, %v367_v42 }
  0x9a   : > { %v329_v48 = vpop.permute.xlu1 %328  ;;  %v324_v49 = vpop.permute.xlu0 %323 }
  0x9b   : > { %v357_v52 = vadd.f32 %v329_v48, %v293_v44  ;;  %v358_v53 = vadd.f32 %v329_v48, %v294_v45  ;;  %v355_v54 = vadd.f32 %v324_v49, %v291_v46  ;;  %v356_v55 = vadd.f32 %v324_v49, %v292_v47  ;;  %598 = vmatprep.subr.bf16.mxu0 %v597_v50 }
  0x9c   : > { %600 = vmatpush1.bf16.msra.mxu0 %v599_v51 }
  0x9d   : > { %v373_v56 = vmax.f32 %v357_v52, 0.0  ;;  %v374_v57 = vmax.f32 %v358_v53, 0.0  ;;  %v371_v58 = vmax.f32 %v355_v54, 0.0  ;;  %v372_v59 = vmax.f32 %v356_v55, 0.0 }
  0x9e   : > { %v264_v60 = vpop.permute.xlu1 %263  ;;  %v259_v61 = vpop.permute.xlu0 %258 }
  0x9f   : > { %v601_v62 = vpack.c.bf16 %v374_v57, %v372_v59  ;;  %v603_v63 = vpack.c.bf16 %v373_v56, %v371_v58  ;;  %v297_v0 = vmul.f32 %v867_v24, %v264_v60  ;;  %v298_v1 = vmul.f32 %v869_v25, %v264_v60 }
  0xa0   : > { %v295_v2 = vmul.f32 %v867_v24, %v259_v61  ;;  %v296_v3 = vmul.f32 %v869_v25, %v259_v61 }
  0xa1   : > { %602 = vmatprep.subr.bf16.mxu0 %v601_v62 }
  0xa2   : > { %v339_v4 = vpop.permute.xlu1 %338  ;;  %v334_v5 = vpop.permute.xlu0 %333  ;;  %604 = vmatpush1.bf16.msra.mxu0 %v603_v63 }
  0xa3   : > { %v361_v6 = vadd.f32 %v339_v4, %v297_v0  ;;  %v362_v7 = vadd.f32 %v339_v4, %v298_v1  ;;  %v359_v8 = vadd.f32 %v334_v5, %v295_v2  ;;  %v360_v9 = vadd.f32 %v334_v5, %v296_v3 }
  0xa5   : > { %v377_v10 = vmax.f32 %v361_v6, 0.0  ;;  %v378_v11 = vmax.f32 %v362_v7, 0.0  ;;  %v375_v12 = vmax.f32 %v359_v8, 0.0  ;;  %v376_v13 = vmax.f32 %v360_v9, 0.0 }
  0xa6   : > { %v274_v14 = vpop.permute.xlu1 %273  ;;  %v269_v15 = vpop.permute.xlu0 %268 }
  0xa7   : > { %v605_v16 = vpack.c.bf16 %v378_v11, %v376_v13  ;;  %v607_v17 = vpack.c.bf16 %v377_v10, %v375_v12  ;;  %v301_v18 = vmul.f32 %v867_v24, %v274_v14  ;;  %v302_v19 = vmul.f32 %v869_v25, %v274_v14 }
  0xa8   : > { %v299_v20 = vmul.f32 %v867_v24, %v269_v15  ;;  %v300_v21 = vmul.f32 %v869_v25, %v269_v15  ;;  %v383_v24 = vld [vmem:[%s952_s3] sm:$0xff] }
  0xa9   : > { %606 = vmatprep.subr.bf16.mxu0 %v605_v16 }
  0xaa   : > { %v349_v22 = vpop.permute.xlu1 %348  ;;  %v344_v23 = vpop.permute.xlu0 %343  ;;  %608 = vmatpush1.bf16.msra.mxu0 %v607_v17 }
  0xab   : > { %v365_v26 = vadd.f32 %v349_v22, %v301_v18  ;;  %v366_v27 = vadd.f32 %v349_v22, %v302_v19  ;;  %v363_v28 = vadd.f32 %v344_v23, %v299_v20  ;;  %v364_v29 = vadd.f32 %v344_v23, %v300_v21 }
  0xad   : > { %v381_v30 = vmax.f32 %v365_v26, 0.0  ;;  %v382_v31 = vmax.f32 %v366_v27, 0.0  ;;  %v379_v32 = vmax.f32 %v363_v28, 0.0  ;;  %v380_v33 = vmax.f32 %v364_v29, 0.0 }
  0xae   : > { %v388_v25 = vpop.permute.xlu0 %387 }
  0xaf   : > { %v609_v34 = vpack.c.bf16 %v382_v31, %v380_v33  ;;  %v611_v35 = vpack.c.bf16 %v381_v30, %v379_v32 }
  0xb1   : > { %610 = vmatprep.subr.bf16.mxu0 %v609_v34 }
  0xb2   : > { %612 = vmatpush1.bf16.msra.mxu0 %v611_v35 }
  0xb5   : > { %586 = vmatmul.mubr.msk.f32.vlgmr.msra.gmra.mrb[0].mxu0 %vm390_vm0, %v383_v24 }
 0x188   : > { %v460_v36 = vpop.f32.mrb[0].mxu0 }
 0x189   : > { %v461_v37 = vadd.f32 %v460_v36, %v388_v25  ;;  %v462_v38 = vpop.f32.mrb[1].mxu0 }
 0x18a   : > { %v463_v39 = vadd.f32 %v462_v38, %v388_v25 }
 0x18b   : > { %v465_v40 = vrot.slane %v461_v37, 4 }
 0x18c   : > { %v471_v41 = vrot.slane %v463_v39, 4 }
 0x18d   : > { %v466_v42 = vmax.f32 %v461_v37, %v465_v40 }
 0x18e   : > { %v472_v43 = vmax.f32 %v463_v39, %v471_v41 }
 0x18f   : > { %v467_v44 = vrot.slane %v466_v42, 2 }
 0x190   : > { %v473_v45 = vrot.slane %v472_v43, 2 }
 0x191   : > { %v468_v46 = vmax.f32 %v466_v42, %v467_v44 }
 0x192   : > { %v474_v47 = vmax.f32 %v472_v43, %v473_v45 }
 0x193   : > { %v469_v48 = vrot.slane %v468_v46, 1 }
 0x194   : > { %v475_v49 = vrot.slane %v474_v47, 1 }
 0x195   : > { %v470_v50 = vmax.f32 %v468_v46, %v469_v48 }
 0x196   : > { %v476_v51 = vmax.f32 %v474_v47, %v475_v49 }
 0x197   : > { %v477_v52 = vsub.f32 %v461_v37, %v470_v50 }
 0x198   : > { %v478_v53 = vsub.f32 %v463_v39, %v476_v51 }
 0x199   : > { %v479_v54 = vmul.f32 1.442695, %v477_v52 }
 0x19a   : > { %v481_v55 = vmul.f32 1.442695, %v478_v53 }
 0x19b   : > { %655 = vpow2.f32 %v479_v54 }
 0x19c   : > { %657 = vpow2.f32 %v481_v55 }
 0x1a5   : > { %v656_v56 = vpop.eup %655 }
 0x1a6   : > { %v658_v57 = vpop.eup %657  ;;  %v483_v58 = vrot.slane %v656_v56, 4 }
 0x1a7   : > { %v489_v59 = vrot.slane %v658_v57, 4 }
 0x1a8   : > { %v484_v60 = vadd.f32 %v656_v56, %v483_v58 }
 0x1a9   : > { %v490_v61 = vadd.f32 %v658_v57, %v489_v59 }
 0x1aa   : > { %v485_v62 = vrot.slane %v484_v60, 2 }
 0x1ab   : > { %v491_v63 = vrot.slane %v490_v61, 2 }
 0x1ac   : > { %v486_v0 = vadd.f32 %v485_v62, %v484_v60 }
 0x1ad   : > { %v492_v1 = vadd.f32 %v491_v63, %v490_v61 }
 0x1ae   : > { %v487_v2 = vrot.slane %v486_v0, 1 }
 0x1af   : > { %v493_v3 = vrot.slane %v492_v1, 1 }
 0x1b0   : > { %v488_v4 = vadd.f32 %v487_v2, %v486_v0 }
 0x1b1   : > { %v494_v5 = vadd.f32 %v493_v3, %v492_v1 }
 0x1b2   : > { %659 = vlog2.f32 %v488_v4 }
 0x1b3   : > { %661 = vlog2.f32 %v494_v5 }
 0x1bc   : > { %v660_v6 = vpop.eup %659  ;;  %510 = sbr.rel (!%p798_p5) target bundleno = 478 (0x1de), region = 44 }
 0x1bd   : > { %v662_v7 = vpop.eup %661  ;;  %v496_v8 = vmul.f32 0.6931472, %v660_v6 }
 0x1be   : > { %v498_v9 = vmul.f32 0.6931472, %v662_v7 }
 0x1bf   : > { %v499_v10 = vsub.f32 %v477_v52, %v496_v8 }
 0x1c0   : > { %v500_v11 = vsub.f32 %v478_v53, %v498_v9 }
 0x1c1   : > { %501 = vst [vmem:[%s216_s16] sm:$0xff] %v499_v10 }
 0x1c2   : > { %502 = vst [vmem:[%s216_s16 + $0x8] sm:$0xff] %v500_v11 }
 0x1c3   : > { %s962_s23 = smov (!%p513_p11, %s512_s23), 2 }
 0x1c4   : > { %s900_s25 = sshll.u32 %s962_s23, 7 }
 0x1c5   : > { %s517_s26 = ssub.s32 256, %s900_s25 }
 0x1c6   : > { %518 = vsyncadd %s895_s17, %s517_s26  ;;  %p590_p12 = scmp.ne.s32.totalorder %s900_s25, 0  ;;  %s596_s30 = sshll.u32 %s781_s22, 8 }
 0x1c7   : > { %s909_s28 = scalar_lea.hbm %s954_s5, %s596_s30  ;;  %s524_s9 = sshll.u32 %s216_s16, 4  ;;  %s525_s9 = int_to_ptr.vmem [resolvable:$true] %s524_s9 }
 0x1c8   : > { %s663_s7 = scalar_lea.vmem %s525_s9, %s900_s25  ;;  %s729_s10 = smov [#allocation2]  }
 0x1c9   : > { %p664_p13 = scmp.ne.s32.totalorder %s525_s9, %s663_s7  ;;  %s667_s11 = sshll.u32 %s729_s10, 4  ;;  %s668_s11 = int_to_ptr.vmem [resolvable:$false] %s667_s11 }
 0x1ca   : > { %s669_s12 = scalar_lea.vmem %s668_s11, 512  ;;  %p670_p2 = scmp.lt.s32.totalorder %s525_s9, %s668_s11 }
 0x1cb   : > { %p665_p0 = pnand %p664_p13, %p590_p12  ;;  %p671_p3 = scmp.lt.s32.totalorder %s669_s12, %s663_s7 }
 0x1cd   : > { %p666_p1 = pneg %p665_p0  ;;  %p672_p4 = por %p671_p3, %p670_p2 }
 0x1cf   : > { %p673_p5 = pnand %p672_p4, %p666_p1 }
 0x1d1   : > { %676 = shalt.err (!%p673_p5)
}
 0x1d2   : > { %s677_s22 = scalar_lea.hbm %s909_s28, %s900_s25  ;;  %s681_s15 = scalar_lea.hbm %s954_s5, 384 }
 0x1d3   : > { %p678_p7 = scmp.ne.s32.totalorder %s909_s28, %s677_s22  ;;  %p682_p10 = scmp.lt.u32.totalorder %s909_s28, %s954_s5 }
 0x1d4   : > { %p683_p11 = scmp.lt.u32.totalorder %s681_s15, %s677_s22  ;;  %p685_p0 = scmp.lt.u32.totalorder %s677_s22, %s909_s28 }
 0x1d5   : > { %p679_p8 = pnand %p678_p7, %p590_p12 }
 0x1d6   : > { %p684_p13 = por %p683_p11, %p682_p10 }
 0x1d7   : > { %p680_p9 = pneg %p679_p8 }
 0x1d8   : > { %p686_p1 = por %p685_p0, %p684_p13 }
 0x1da   : > { %p687_p2 = pnand %p686_p1, %p680_p9 }
 0x1dc   : > { %690 = shalt.err (!%p687_p2)
}
 0x1dd   : > { %527 = dma.vmem_to_hbm [thread:$0]  (%p590_p12), %s525_s9, %s900_s25, %s909_s28, %s895_s17  }
 0x1de PF: > { %p618_p3 = scmp.ge.s32.totalorder %s725_s21, 2  ;;  %s536_s26 = sand.u32 1, %s713_s18  }
 0x1df   : > { %s537_s30 = scalar_lea.sflag [#allocation3], %s536_s26 }
 0x1e0   : > { %p615_p4 = pnand %p618_p3, %p802_p6 }
 0x1e2   : > { %708 = dma.done.wait (!%p615_p4), %s537_s30, 256  }
 0x1e3   : > { %710 = vsyncadd (!%p615_p4), %s537_s30, 4294967040  ;;  %p15_p5 = scmp.ge.s32.totalorder %s785_s24, 4   ;;  %s957_s18 = smov %s717_s19 }
 0x1e4   : > { %s958_s19 = smov %s721_s20  ;;  %s959_s20 = smov %s796_s27 }
 0x1e5   : > { %s960_s21 = smov %s785_s24  ;;  %17 = sbr.rel (!%p15_p5) target bundleno = 3 (0x3), region = 75 }
 0x1ec   :  { %542 = vsyncpa [#allocation3], 1 }
 0x1ed   :  { %544 = vsyncpa [#allocation3 + $0x1], 1 }

</bundles_post_ra>
